<compile_context>
chip_gen: v7x
topology: tpu7x:2x2x1
jax: 0.10.0
libtpu: 0.0.40
codegen_flags: <defaults>
</compile_context>

<pallas_src>
from functools import lru_cache, partial

import jax
import jax.numpy as jnp
from jax.experimental import pallas as pl
from jax.experimental.pallas import tpu as pltpu

_EPS = 1e-5


# ---------------------------------------------------------------------------
# VMEM limit derived from the actual chip (v5e/v6e: 128 MiB, v7x: 64 MiB/TC).
# ---------------------------------------------------------------------------
@lru_cache(maxsize=None)
def _vmem_limit_bytes():
    fallback = 64 * 1024 * 1024          # safe on every generation
    try:
        cap = int(getattr(pltpu.get_tpu_info(), "vmem_capacity_bytes", fallback))
    except Exception:
        cap = fallback
    return (cap // 4) * 3                # ~96 MiB on v5e/v6e, ~48 MiB on v7x


# ---------------------------------------------------------------------------
# Roll-convention probe (one tiny pallas_call, cached): guarantees the shift
# sign used for the 27 conv taps matches the hardware rotate direction.
# ---------------------------------------------------------------------------
def _roll_probe_kernel(x_ref, o_ref):
    o_ref[...] = pltpu.roll(x_ref[...], 1, axis=1)


@lru_cache(maxsize=None)
def _roll_sign():
    x = jnp.arange(128, dtype=jnp.float32).reshape(1, 128)
    y = pl.pallas_call(
        _roll_probe_kernel,
        out_shape=jax.ShapeDtypeStruct((1, 128), jnp.float32),
    )(x)
    # jnp.roll convention (result[i] = x[i - shift]) -> y[0,0] == 127 -> sign=-1
    # opposite convention (result[i] = x[i + shift]) -> y[0,0] == 1   -> sign=+1
    return -1 if int(y[0, 0]) == 127 else +1


# ---------------------------------------------------------------------------
# Shared InstanceNorm + ReLU epilogue.  `y` is a (C, S_pad) f32 slab whose
# lane-pad region has already been zeroed; stats are taken over S_real.
# ---------------------------------------------------------------------------
def _instance_norm_relu(y, s_real, eps):
    inv_n = 1.0 / float(s_real)
    mean = jnp.sum(y, axis=-1, keepdims=True) * inv_n
    msq = jnp.sum(y * y, axis=-1, keepdims=True) * inv_n
    var = jnp.maximum(msq - mean * mean, 0.0)      # guard cancellation
    return jnp.maximum((y - mean) * jax.lax.rsqrt(var + eps), 0.0)


# ---------------------------------------------------------------------------
# 3x3x3 conv (pad=1) + InstanceNorm + ReLU, one batch slab per grid step.
# Single stacked K = 27*C_in matmul through a VMEM scratch.
# ---------------------------------------------------------------------------
def _conv3_in_relu_kernel(x_ref, w_ref, b_ref, o_ref, stack_ref, *,
                          D, H, W, S_real, eps, roll_sign):
    x = x_ref[0]                                   # (C_in, S_pad)
    c_in, s_pad = x.shape
    hw = H * W

    # Coordinates + separable boundary masks, computed exactly once.
    pos = jax.lax.broadcasted_iota(jnp.int32, (1, s_pad), 1)
    pd = pos // hw
    ph = (pos // W) % H
    pw = pos % W

    def axis_masks(coord, extent):
        return [(((coord + k) >= 0) & ((coord + k) < extent)).astype(jnp.float32)
                for k in (-1, 0, 1)]

    d_ok = axis_masks(pd, D)
    h_ok = axis_masks(ph, H)
    w_ok = axis_masks(pw, W)

    # Build the stacked (27*C_in, S_pad) activation matrix: one shifted,
    # boundary-masked copy of x per tap (roll = XLU, mask = 1 broadcast mul).
    for kd in (-1, 0, 1):
        for kh in (-1, 0, 1):
            for kw in (-1, 0, 1):
                off = kd * hw + kh * W + kw
                if off == 0:
                    shifted = x
                else:
                    shifted = pltpu.roll(x, (roll_sign * off) % s_pad, axis=1)
                m = d_ok[kd + 1] * h_ok[kh + 1] * w_ok[kw + 1]    # (1, S_pad)
                k = (kd + 1) * 9 + (kh + 1) * 3 + (kw + 1)
                stack_ref[pl.ds(k * c_in, c_in), :] = shifted * m

    # One deep MXU contraction; accumulation stays inside the MXU.
    acc = jnp.dot(w_ref[...], stack_ref[...],
                  preferred_element_type=jnp.float32)
    acc = acc + b_ref[...]                          # bias (C_out, 1)

    if s_pad != S_real:
        pad_mask = (pos < S_real).astype(jnp.float32)
        acc = acc * pad_mask                        # exact IN stats
        out = _instance_norm_relu(acc, S_real, eps) * pad_mask   # zero pad lanes
    else:
        out = _instance_norm_relu(acc, S_real, eps)
    o_ref[0] = out.astype(o_ref.dtype)


def _conv3_in_relu(x, w_stacked, b, *, D, H, W, S_real, eps=_EPS):
    B, c_in, s_pad = x.shape
    c_out = w_stacked.shape[0]
    kern = partial(_conv3_in_relu_kernel, D=D, H=H, W=W, S_real=S_real,
                   eps=eps, roll_sign=_roll_sign())
    return pl.pallas_call(
        kern,
        out_shape=jax.ShapeDtypeStruct((B, c_out, s_pad), x.dtype),
        grid=(B,),
        in_specs=[
            pl.BlockSpec((1, c_in, s_pad), lambda i: (i, 0, 0)),
            pl.BlockSpec(w_stacked.shape, lambda i: (0, 0)),
            pl.BlockSpec(b.shape, lambda i: (0, 0)),
        ],
        out_specs=pl.BlockSpec((1, c_out, s_pad), lambda i: (i, 0, 0)),
        scratch_shapes=[pltpu.VMEM((27 * c_in, s_pad), jnp.float32)],
        compiler_params=pltpu.CompilerParams(
            dimension_semantics=("parallel",),
            vmem_limit_bytes=_vmem_limit_bytes()),
    )(x, w_stacked, b)


# ---------------------------------------------------------------------------
# Fused pointwise chain: proj3 -> (x1 + x2) -> proj4 -> (+x) -> proj5, each
# followed by InstanceNorm + ReLU.  x2 and y never leave VMEM.
# ---------------------------------------------------------------------------
def _fused_pw_kernel(xf_ref, x1_ref, w3_ref, b3_ref, w4_ref, b4_ref,
                     w5_ref, b5_ref, o_ref, *, S_real, eps):
    xf = xf_ref[0].astype(jnp.float32)              # (C, S_pad)
    x1 = x1_ref[0].astype(jnp.float32)
    s_pad = xf.shape[-1]

    if s_pad != S_real:
        pos = jax.lax.broadcasted_iota(jnp.int32, (1, s_pad), 1)
        pad_mask = (pos < S_real).astype(jnp.float32)
    else:
        pad_mask = None

    def stage(x_in, w_ref, b_ref):
        y = jnp.dot(w_ref[...], x_in, preferred_element_type=jnp.float32)
        y = y + b_ref[...]
        if pad_mask is not None:
            y = y * pad_mask
        return _instance_norm_relu(y, S_real, eps)

    x2 = stage(xf, w3_ref, b3_ref)                  # proj3 / norm3 / relu
    y = stage(x1 + x2, w4_ref, b4_ref)              # proj4 / norm4 / relu
    out = stage(y + xf, w5_ref, b5_ref)             # proj5 / norm5 / relu
    if pad_mask is not None:
        out = out * pad_mask                        # keep pad lanes zero
    o_ref[0] = out.astype(o_ref.dtype)


def _fused_pw(xf, x1, w3, b3, w4, b4, w5, b5, *, S_real, out_dtype, eps=_EPS):
    B, c_in, s_pad = xf.shape
    c_out = w5.shape[0]
    kern = partial(_fused_pw_kernel, S_real=S_real, eps=eps)
    const2 = lambda i: (0, 0)
    return pl.pallas_call(
        kern,
        out_shape=jax.ShapeDtypeStruct((B, c_out, s_pad), out_dtype),
        grid=(B,),
        in_specs=[
            pl.BlockSpec((1, c_in, s_pad), lambda i: (i, 0, 0)),
            pl.BlockSpec((1, c_in, s_pad), lambda i: (i, 0, 0)),
            pl.BlockSpec(w3.shape, const2),
            pl.BlockSpec(b3.shape, const2),
            pl.BlockSpec(w4.shape, const2),
            pl.BlockSpec(b4.shape, const2),
            pl.BlockSpec(w5.shape, const2),
            pl.BlockSpec(b5.shape, const2),
        ],
        out_specs=pl.BlockSpec((1, c_out, s_pad), lambda i: (i, 0, 0)),
        compiler_params=pltpu.CompilerParams(
            dimension_semantics=("parallel",),
            vmem_limit_bytes=_vmem_limit_bytes()),
    )(xf, x1, w3, b3, w4, b4, w5, b5)


# ---------------------------------------------------------------------------
# Full CCSAttention forward.
# ---------------------------------------------------------------------------
def ccs_attention_forward(x, params, *, eps=_EPS, act_dtype=None):
    """act_dtype: HBM dtype for inter-stage activations (e.g. jnp.bfloat16 on
    v6e/v7x to halve DMA bytes); in-kernel math stays f32.  None -> x.dtype."""
    B, C, D, H, W = x.shape
    S = D * H * W
    s_pad = pl.cdiv(S, 128) * 128
    act_dtype = x.dtype if act_dtype is None else act_dtype

    xf = x.reshape(B, C, S)
    if s_pad != S:
        xf = jnp.pad(xf, ((0, 0), (0, 0), (0, s_pad - S)))
    xf = xf.astype(act_dtype)

    def prep3(w):   # (Co, Ci, 3, 3, 3) -> (Co, 27*Ci), tap-major K blocks
        co, ci = w.shape[0], w.shape[1]
        return jnp.transpose(w.reshape(co, ci, 27), (0, 2, 1)).reshape(co, 27 * ci)

    def prep1(w):   # (Co, Ci, 1, 1, 1) -> (Co, Ci)
        return w.reshape(w.shape[0], w.shape[1])

    def prepb(b):
        return b.reshape(-1, 1)

    x1 = _conv3_in_relu(xf, prep3(params["proj_w"]), prepb(params["proj_b"]),
                        D=D, H=H, W=W, S_real=S, eps=eps)
    x1 = _conv3_in_relu(x1, prep3(params["proj2_w"]), prepb(params["proj2_b"]),
                        D=D, H=H, W=W, S_real=S, eps=eps)
    out = _fused_pw(xf, x1,
                    prep1(params["proj3_w"]), prepb(params["proj3_b"]),
                    prep1(params["proj4_w"]), prepb(params["proj4_b"]),
                    prep1(params["proj5_w"]), prepb(params["proj5_b"]),
                    S_real=S, out_dtype=x.dtype, eps=eps)

    c_half = params["proj5_w"].shape[0]
    return out[:, :, :S].reshape(B, c_half, D, H, W)


# ---------------------------------------------------------------------------
# Pure-JAX reference (high-precision convs) for the correctness check.
# ---------------------------------------------------------------------------
def reference_forward(x, params, eps=_EPS):
    hp = jax.lax.Precision.HIGHEST

    def inorm_relu(y):
        m = y.mean(axis=(2, 3, 4), keepdims=True)
        v = ((y - m) ** 2).mean(axis=(2, 3, 4), keepdims=True)
        return jnp.maximum((y - m) / jnp.sqrt(v + eps), 0.0)

    def conv3(z, w, b):
        y = jax.lax.conv_general_dilated(
            z, w, window_strides=(1, 1, 1),
            padding=((1, 1), (1, 1), (1, 1)),
            dimension_numbers=("NCDHW", "OIDHW", "NCDHW"),
            precision=hp)
        return y + b.reshape(1, -1, 1, 1, 1)

    def conv1(z, w, b):
        y = jnp.einsum("oi,bidhw->bodhw",
                       w.reshape(w.shape[0], w.shape[1]), z, precision=hp)
        return y + b.reshape(1, -1, 1, 1, 1)

    x1 = inorm_relu(conv3(x, params["proj_w"], params["proj_b"]))
    x1 = inorm_relu(conv3(x1, params["proj2_w"], params["proj2_b"]))
    x2 = inorm_relu(conv1(x, params["proj3_w"], params["proj3_b"]))
    y = inorm_relu(conv1(x1 + x2, params["proj4_w"], params["proj4_b"]))
    y = y + x
    return inorm_relu(conv1(y, params["proj5_w"], params["proj5_b"]))


if __name__ == "__main__":
    B, C, D, H, W = 2, 16, 4, 8, 8          # S = 256 (lane-dense)
    key = jax.random.PRNGKey(0)
    ks = jax.random.split(key, 11)

    x = jax.random.normal(ks[0], (B, C, D, H, W), dtype=jnp.float32)

    def w3(k, co, ci):
        return 0.08 * jax.random.normal(k, (co, ci, 3, 3, 3), dtype=jnp.float32)

    def w1(k, co, ci):
        return 0.25 * jax.random.normal(k, (co, ci, 1, 1, 1), dtype=jnp.float32)

    def bias(k, co):
        return 0.1 * jax.random.normal(k, (co,), dtype=jnp.float32)

    params = {
        "proj_w": w3(ks[1], C, C), "proj_b": bias(ks[2], C),
        "proj2_w": w3(ks[3], C, C), "proj2_b": bias(ks[4], C),
        "proj3_w": w1(ks[5], C, C), "proj3_b": bias(ks[6], C),
        "proj4_w": w1(ks[7], C, C), "proj4_b": bias(ks[8], C),
        "proj5_w": w1(ks[9], C // 2, C), "proj5_b": bias(ks[10], C // 2),
    }

    out = ccs_attention_forward(x, params)
    out = jax.block_until_ready(out)

    ref = reference_forward(x, params)
    assert out.shape == (B, C // 2, D, H, W)

    # Max-abs tolerance covers the MXU's default-precision f32 matmul
    # decomposition (bf16 passes) across 5 chained stages; any semantic error
    # (tap order, boundary mask, IN stats) produces O(1) diffs on most voxels.
    diff = jnp.abs(out - ref)
    max_abs = float(jnp.max(diff))
    rel_l2 = float(jnp.linalg.norm(out - ref) / (jnp.linalg.norm(ref) + 1e-12))
    assert max_abs < 5e-2, max_abs
    assert rel_l2 < 2.5e-2, rel_l2          # tighter whole-tensor check
    print("KERNEL_OK")
</pallas_src>

<mosaic_0001>
module attributes {stable_mosaic.version = 11 : i64} {
  func.func @_roll_probe_kernel(%arg0: memref<1x128xf32, #tpu.memory_space<vmem>>, %arg1: memref<1x128xf32, #tpu.memory_space<vmem>>) attributes {dimension_semantics = [], scalar_prefetch = 0 : i64, scratch_operands = 0 : i64, tpu.core_type = #tpu.core_type<tc>} {
    %c0 = arith.constant 0 : index
    %c0_0 = arith.constant 0 : index
    %0 = vector.load %arg0[%c0, %c0_0] : memref<1x128xf32, #tpu.memory_space<vmem>>, vector<1x128xf32>
    %c1_i32 = arith.constant 1 : i32
    %1 = tpu.dynamic_rotate %0 by %c1_i32 dim 1 : vector<1x128xf32>, i32 -> vector<1x128xf32>
    %c0_1 = arith.constant 0 : index
    %c0_2 = arith.constant 0 : index
    %2 = vector.load %arg1[%c0_1, %c0_2] : memref<1x128xf32, #tpu.memory_space<vmem>>, vector<1x128xf32>
    tpu.vector_store %arg1[%c0_1, %c0_2], %1 {strides = array<i32>} : memref<1x128xf32, #tpu.memory_space<vmem>>, vector<1x128xf32>,
    return
  }
}

</mosaic_0001>

<bundles_post_ra>
// kernel: tpu_custom_call.1
= control target key start
LH: loop header
LB: loop body
LE: loop exit
PB: predicated region body
PF: predicated region fallthrough
CT: control target
= control target key end

     0   :  { %6 = vsyncpa [#allocation3], 0  ;;  %s128_s0 = inlined_call_operand.hbm [shape: f32[1,128], index: 0, kind: input, shape index: {}]   ;;  %s129_s1 = inlined_call_operand.hbm [shape: f32[1,128], index: 1, kind: output, shape index: {}]  }
   0x1   :  { %7 = vsyncpa [#allocation4], 0  ;;  %s91_s6 = smov [#allocation2]   ;;  %s43_s10 = scalar_lea.hbm %s128_s0, 16 }
   0x2   :  { %s14_s7 = sshll.u32 %s91_s6, 4  ;;  %p44_p0 = scmp.ne.s32.totalorder %s128_s0, %s43_s10  ;;  %s15_s7 = int_to_ptr.vmem [resolvable:$true] %s14_s7 }
   0x3   :  { %p47_p1 = scmp.lt.u32.totalorder %s43_s10, %s128_s0 }
   0x5   :  { %p49_p2 = pnand %p47_p1, %p44_p0 }
   0x7   :  { %52 = shalt.err (!%p49_p2)
}
   0x8   :  { %s53_s15 = scalar_lea.vmem %s15_s7, 16  ;;  %s57_s16 = scalar_lea.vmem %s15_s7, 32 }
   0x9   :  { %p54_p3 = scmp.ne.s32.totalorder %s15_s7, %s53_s15  ;;  %p58_p4 = scmp.lt.s32.totalorder %s15_s7, %s15_s7 }
   0xa   :  { %p59_p5 = scmp.lt.s32.totalorder %s57_s16, %s53_s15 }
   0xc   :  { %p60_p6 = por %p59_p5, %p58_p4 }
   0xe   :  { %p61_p7 = pnand %p60_p6, %p54_p3 }
  0x10   :  { %64 = shalt.err (!%p61_p7)
}
  0x11   :  { %17 = dma.hbm_to_vmem [thread:$0]  %s128_s0, 16, %s15_s7, [#allocation3]  }
  0x12   :  { %87 = dma.done.wait [#allocation3], 16  }
  0x13   :  { %88 = vsyncadd [#allocation3], 4294967280  ;;  %v21_v0 = vld [vmem:[#allocation2] sm:$0x1]  ;;  %s92_s19 = smov 1   ;;  %s93_s20 = smov [#allocation5]  }
  0x14   :  { %22 = vrot.lane.b32.xlu0 %v21_v0, %s92_s19  ;;  %s31_s21 = sshll.u32 %s93_s20, 4  ;;  %s32_s21 = int_to_ptr.vmem [resolvable:$true] %s31_s21 }
  0x15   :  { %s65_s22 = scalar_lea.vmem %s32_s21, 16  ;;  %s69_s23 = scalar_lea.vmem %s32_s21, 32 }
  0x16   :  { %p66_p8 = scmp.ne.s32.totalorder %s32_s21, %s65_s22  ;;  %p70_p9 = scmp.lt.s32.totalorder %s32_s21, %s32_s21 }
  0x17   :  { %p71_p10 = scmp.lt.s32.totalorder %s69_s23, %s65_s22 }
  0x19   :  { %p72_p11 = por %p71_p10, %p70_p9 }
  0x1b   :  { %p73_p12 = pnand %p72_p11, %p66_p8 }
  0x86   :  { %v23_v1 = vpop.permute.xlu0 %22 }
  0x87   :  { %24 = vst [vmem:[#allocation5] sm:$0x1] %v23_v1 }
  0x88   :  { %76 = shalt.err (!%p73_p12)
}
  0x89   :  { %s77_s25 = scalar_lea.hbm %s129_s1, 16 }
  0x8a   :  { %p78_p13 = scmp.ne.s32.totalorder %s129_s1, %s77_s25  ;;  %p81_p0 = scmp.lt.u32.totalorder %s77_s25, %s129_s1 }
  0x8c   :  { %p83_p1 = pnand %p81_p0, %p78_p13 }
  0x8e   :  { %86 = shalt.err (!%p83_p1)
}
  0x8f   :  { %34 = dma.vmem_to_hbm [thread:$0]  %s32_s21, 16, %s129_s1, [#allocation4]  }
  0x90   :  { %89 = dma.done.wait [#allocation4], 16  }
  0x91   :  { %90 = vsyncadd [#allocation4], 4294967280 }
  0x92   :  { %38 = vsyncpa [#allocation3], 1 }
  0x93   :  { %39 = vsyncpa [#allocation4], 1 }

</bundles_post_ra>
